<compile_context>
chip_gen: v6e
topology: v6e:2x2x1
jax: 0.10.0
libtpu: 0.0.40
codegen_flags: <defaults>
</compile_context>

<pallas_src>
import math

import numpy as np
import jax
import jax.numpy as jnp
from jax.experimental import pallas as pl
from jax.experimental.pallas import tpu as pltpu


# ----------------------------------------------------------------------------
# Pure-python reconstruction of the basis utilities (QOptCraft-style ordering).
# ----------------------------------------------------------------------------
def hilbert_dim(modes: int, photons: int) -> int:
    return math.comb(modes + photons - 1, photons)


def get_photon_basis(modes: int, photons: int):
    """All Fock states of `modes` modes with `photons` photons
    (first-mode photon count descending, deterministic)."""
    if modes == 1:
        return [(photons,)]
    basis = []
    for n in range(photons, -1, -1):
        for rest in get_photon_basis(modes - 1, photons - n):
            basis.append((n,) + rest)
    return basis


def basis_dictionary_image_to_fock(d1: int, d2: int):
    dictionary = {}
    fock_basis = get_photon_basis(d1 + d2, 2)
    for i in range(d1):
        for j in range(d2):
            fock_state = [0] * (d1 + d2)
            fock_state[i] = 1
            fock_state[d1 + j] = 1
            dictionary[i * d2 + j] = fock_basis.index(tuple(fock_state))
    return dictionary


def passage_matrix_image_fock(d1: int, d2: int) -> np.ndarray:
    """(D, d1*d2) uint8 selection matrix (one 1 per column)."""
    dimension = hilbert_dim(d1 + d2, 2)
    passage = np.zeros((dimension, d1 * d2), dtype=np.uint8)
    fock_image_dict = basis_dictionary_image_to_fock(d1, d2)
    for i in range(d1):
        for j in range(d2):
            passage[fock_image_dict[i * d2 + j], i * d2 + j] = 1
    return passage


def _round_up(x: int, m: int) -> int:
    return (x + m - 1) // m * m


# ----------------------------------------------------------------------------
# Pallas kernel: one grid step == TB batch elements.
#   p_ref  : (Dp_sub , K)        zero-row-padded P        (resident across grid)
#   pt_ref : (K, Dp_lane)        zero-col-padded P^T      (resident across grid)
#   x_ref  : (TB, K, K)          density operators in the Image basis
#   o_ref  : (TB, Dp_sub, Dp_lane) padded Fock-basis density operators
# ----------------------------------------------------------------------------
def _basis_change_kernel(p_ref, pt_ref, x_ref, o_ref):
    p = p_ref[...]                                     # (Dp_sub, K)   f32
    pt = pt_ref[...]                                   # (K, Dp_lane)  f32
    tb = x_ref.shape[0]
    for b in range(tb):                                # static unroll (TB small)
        # y_b = x_b @ P^T : (K, K) @ (K, Dp_lane) -> (K, Dp_lane)
        y = jnp.dot(x_ref[b], pt, preferred_element_type=jnp.float32)
        # out_b = P @ y_b : (Dp_sub, K) @ (K, Dp_lane) -> (Dp_sub, Dp_lane)
        o_ref[b] = jnp.dot(p, y, preferred_element_type=jnp.float32)


# ----------------------------------------------------------------------------
# Factory: builds the (padded) passage matrices with NumPy ONCE and returns a
# jitted forward() equivalent to the PyTorch module's forward.
# ----------------------------------------------------------------------------
def make_basis_change_image_to_fock_density(d1: int, d2: int, tb_max: int = 8):
    passage_np = passage_matrix_image_fock(d1, d2).astype(np.float32)   # (D, K)
    D, K = passage_np.shape
    dp_sub = _round_up(D, 8)          # sublane-dense output rows
    dp_lane = _round_up(D, 128)       # lane-dense output columns

    p_pad_np = np.zeros((dp_sub, K), np.float32)
    p_pad_np[:D, :] = passage_np
    pt_pad_np = np.zeros((K, dp_lane), np.float32)
    pt_pad_np[:, :D] = passage_np.T

    p_dev = jnp.asarray(p_pad_np)     # host constants, built once outside jit
    pt_dev = jnp.asarray(pt_pad_np)

    @jax.jit
    def forward(input_state: jax.Array) -> jax.Array:
        """out_b = P @ x_b @ P^T.  Accepts (K, K) or (B, K, K) input."""
        single = input_state.ndim == 2
        x = input_state[None] if single else input_state
        x = x.astype(jnp.float32)
        B = x.shape[0]

        # Block the batch: keep grid length >= 2 whenever B >= 2 so v7x's two
        # TensorCores both get work; amortize per-step overhead otherwise.
        tb = 1 if B <= 1 else min(tb_max, (B + 1) // 2)
        n_blocks = -(-B // tb)
        b_pad = n_blocks * tb
        if b_pad != B:
            x = jnp.concatenate(
                [x, jnp.zeros((b_pad - B, K, K), jnp.float32)], axis=0)

        out_padded = pl.pallas_call(
            _basis_change_kernel,
            out_shape=jax.ShapeDtypeStruct((b_pad, dp_sub, dp_lane), jnp.float32),
            grid_spec=pltpu.PrefetchScalarGridSpec(
                num_scalar_prefetch=0,
                grid=(n_blocks,),
                in_specs=[
                    pl.BlockSpec((dp_sub, K), lambda i: (0, 0)),    # P, resident
                    pl.BlockSpec((K, dp_lane), lambda i: (0, 0)),   # P^T, resident
                    pl.BlockSpec((tb, K, K), lambda i: (i, 0, 0)),  # x block
                ],
                out_specs=pl.BlockSpec((tb, dp_sub, dp_lane),
                                       lambda i: (i, 0, 0)),
            ),
            compiler_params=pltpu.CompilerParams(
                dimension_semantics=("parallel",)),   # batch blocks split across TCs
        )(p_dev, pt_dev, x)

        out = out_padded[:B, :D, :D]                  # padded region is exactly zero
        return out[0] if single else out

    return forward, passage_np


# ----------------------------------------------------------------------------
if __name__ == "__main__":
    # Small shapes consistent with the module: two image registers d1 = d2 = 4
    # -> K = d1*d2 = 16, D = hilbert_dim(8, 2) = 36; batch of 2 density ops.
    d1, d2 = 4, 4
    B = 2
    K = d1 * d2
    D = hilbert_dim(d1 + d2, 2)

    forward, passage_np = make_basis_change_image_to_fock_density(d1, d2)

    key = jax.random.PRNGKey(0)
    x = jax.random.normal(key, (B, K, K), dtype=jnp.float32)        # (2, 16, 16)

    out = jax.block_until_ready(forward(x))

    # Reference check against plain NumPy (batched).
    ref = passage_np @ np.asarray(x) @ passage_np.T                 # (2, 36, 36)
    assert out.shape == (B, D, D)
    np.testing.assert_allclose(np.asarray(out), ref, rtol=1e-5, atol=1e-5)

    # Single-sample path (exact PyTorch module signature: 2-D input).
    out_single = jax.block_until_ready(forward(x[0]))
    np.testing.assert_allclose(np.asarray(out_single),
                               passage_np @ np.asarray(x[0]) @ passage_np.T,
                               rtol=1e-5, atol=1e-5)

    # Ragged-batch path (exercises the zero-padded tail guard).
    x5 = jax.random.normal(jax.random.PRNGKey(1), (5, K, K), dtype=jnp.float32)
    out5 = jax.block_until_ready(forward(x5))
    ref5 = passage_np @ np.asarray(x5) @ passage_np.T
    np.testing.assert_allclose(np.asarray(out5), ref5, rtol=1e-5, atol=1e-5)

    print("KERNEL_OK")
</pallas_src>

<mosaic_0001>
module attributes {stable_mosaic.version = 11 : i64} {
  func.func @_basis_change_kernel(%arg0: i32, %arg1: memref<40x16xf32, #tpu.memory_space<vmem>>, %arg2: memref<16x128xf32, #tpu.memory_space<vmem>>, %arg3: memref<1x16x16xf32, #tpu.memory_space<vmem>>, %arg4: memref<1x40x128xf32, #tpu.memory_space<vmem>>) attributes {dimension_semantics = [#tpu.dimension_semantics<parallel>], iteration_bounds = array<i64: 2>, scalar_prefetch = 0 : i64, scratch_operands = 0 : i64, tpu.core_type = #tpu.core_type<tc>, window_params = [{pipeline_mode = #tpu.pipeline_mode<synchronous>, transform_indices = @transform_0, window_bounds = array<i64: 40, 16>}, {pipeline_mode = #tpu.pipeline_mode<synchronous>, transform_indices = @transform_1, window_bounds = array<i64: 16, 128>}, {transform_indices = @transform_2, window_bounds = array<i64: 1, 16, 16>}, {transform_indices = @transform_3, window_bounds = array<i64: 1, 40, 128>}]} {
    %c0 = arith.constant 0 : index
    %c0_0 = arith.constant 0 : index
    %0 = vector.load %arg1[%c0, %c0_0] : memref<40x16xf32, #tpu.memory_space<vmem>>, vector<40x16xf32>
    %c0_1 = arith.constant 0 : index
    %c0_2 = arith.constant 0 : index
    %1 = vector.load %arg2[%c0_1, %c0_2] : memref<16x128xf32, #tpu.memory_space<vmem>>, vector<16x128xf32>
    %c0_3 = arith.constant 0 : index
    %c0_4 = arith.constant 0 : index
    %c0_5 = arith.constant 0 : index
    %2 = vector.load %arg3[%c0_3, %c0_4, %c0_5] : memref<1x16x16xf32, #tpu.memory_space<vmem>>, vector<1x16x16xf32>
    %3 = vector.shape_cast %2 : vector<1x16x16xf32> to vector<16x16xf32>
    %cst = arith.constant dense<0.000000e+00> : vector<16x128xf32>
    %4 = tpu.matmul %3, %1, %cst {dimension_numbers = #tpu.dot_dimension_numbers<[1], [0], [0], [1], [0, 0, 1, 1], [], []>} : vector<16x16xf32>, vector<16x128xf32>, vector<16x128xf32> -> vector<16x128xf32>
    %cst_6 = arith.constant dense<0.000000e+00> : vector<40x128xf32>
    %5 = tpu.matmul %0, %4, %cst_6 {dimension_numbers = #tpu.dot_dimension_numbers<[1], [0], [0], [1], [0, 0, 1, 1], [], []>} : vector<40x16xf32>, vector<16x128xf32>, vector<40x128xf32> -> vector<40x128xf32>
    %c0_7 = arith.constant 0 : index
    %c0_8 = arith.constant 0 : index
    %c0_9 = arith.constant 0 : index
    %6 = vector.load %arg4[%c0_7, %c0_8, %c0_9] : memref<1x40x128xf32, #tpu.memory_space<vmem>>, vector<1x40x128xf32>
    %7 = vector.shape_cast %6 : vector<1x40x128xf32> to vector<40x128xf32>
    %8 = vector.shape_cast %5 : vector<40x128xf32> to vector<1x40x128xf32>
    tpu.vector_store %arg4[%c0_7, %c0_8, %c0_9], %8 {strides = array<i32>} : memref<1x40x128xf32, #tpu.memory_space<vmem>>, vector<1x40x128xf32>,
    return
  }
  func.func @transform_0(%arg0: i32) -> (i32, i32) {
    %c0_i32 = arith.constant 0 : i32
    %c0_i32_0 = arith.constant 0 : i32
    %c0_i32_1 = arith.constant 0 : i32
    return %c0_i32, %c0_i32_0 : i32, i32
  }
  func.func @transform_1(%arg0: i32) -> (i32, i32) {
    %c0_i32 = arith.constant 0 : i32
    %c0_i32_0 = arith.constant 0 : i32
    %c0_i32_1 = arith.constant 0 : i32
    return %c0_i32, %c0_i32_0 : i32, i32
  }
  func.func @transform_2(%arg0: i32) -> (i32, i32, i32) {
    %c0_i32 = arith.constant 0 : i32
    %c0_i32_0 = arith.constant 0 : i32
    %c0_i32_1 = arith.constant 0 : i32
    return %arg0, %c0_i32, %c0_i32_0 : i32, i32, i32
  }
  func.func @transform_3(%arg0: i32) -> (i32, i32, i32) {
    %c0_i32 = arith.constant 0 : i32
    %c0_i32_0 = arith.constant 0 : i32
    %c0_i32_1 = arith.constant 0 : i32
    return %arg0, %c0_i32, %c0_i32_0 : i32, i32, i32
  }
}

</mosaic_0001>

<bundles_post_ra>
// kernel: forward.1
= control target key start
LH: loop header
LB: loop body
LE: loop exit
PB: predicated region body
PF: predicated region fallthrough
CT: control target
= control target key end

     0   :  { %8 = vsyncpa [#allocation3], 0  ;;  %s949_s0 = inlined_call_operand.hbm [shape: f32[40,16], index: 0, kind: input, shape index: {}]   ;;  %s950_s1 = inlined_call_operand.hbm [shape: f32[16,128], index: 1, kind: input, shape index: {}]   ;;  %s951_s2 = inlined_call_operand.hbm [shape: f32[2,16,16], index: 2, kind: input, shape index: {}]   ;;  %s952_s3 = inlined_call_operand.vmem [shape: f32[2,40,128], index: 3, kind: output, shape index: {}]  }
   0x1   :  { %9 = vsyncpa [#allocation5], 0  ;;  %s785_s12 = smov 0   ;;  %s787_s13 = smov 0  }
   0x2   :  { %s789_s14 = smov 0   ;;  %s791_s15 = smov 0  }
   0x3 LB: > { %s804_s16 = sadd.s32 4294967295, %s756_s15   ;;  %s807_s17 = sadd.s32 1, %s756_s15   ;;  %s756_s15 = sphi %s791_s15, %s969_s15   ;;  %s752_s14 = sphi %s789_s14, %s968_s14   ;;  %s748_s13 = sphi %s787_s13, %s967_s13   ;;  %s744_s12 = sphi %s785_s12, %s966_s12  }
   0x4   : > { %s61_s18 = ssub.s32 %s756_s15, %s807_s17  ;;  %s64_s19 = sadd.s32 1, %s752_s14 }
   0x5   : > { %p62_p0 = scmp.eq.s32.totalorder %s61_s18, 0  ;;  %p71_p1 = scmp.ne.s32.totalorder %s752_s14, %s748_s13 }
   0x6   : > { %p72_p2 = scmp.eq.s32.totalorder %s756_s15, 0  ;;  %p77_p3 = scmp.ne.s32.totalorder %s748_s13, %s744_s12 }
   0x7   : > { %s817_s20 = scalar_select %p62_p0, %s752_s14, %s64_s19  }
   0x8   : > { %p73_p4 = por %p72_p2, %p71_p1  ;;  %p953_p5 = scmp.eq.s32.totalorder %s804_s16, 0 }
   0x9   : > { %p506_p6 = scmp.ge.s32.totalorder %s756_s15, 1  ;;  %p114_p7 = scmp.lt.s32.totalorder %s756_s15, 3 }
   0xa   : > { %p824_p8 = por %p953_p5, %p77_p3  ;;  %s758_s23 = smov [#allocation2]  }
   0xb   : > { %p828_p9 = pnand %p506_p6, %p114_p7  ;;  %s126_s24 = sshll.u32 %s758_s23, 4  ;;  %s127_s24 = int_to_ptr.vmem [resolvable:$true] %s126_s24 }
   0xc   : > { %s956_s21 = scalar_select %p824_p8, 1, 0 }
   0xd   : > { %s957_s22 = scalar_select %p828_p9, 1, 0 }
   0xe   : > { %p580_p10 = pneg %p828_p9  ;;  %p593_p12 = scmp.lt.s32.totalorder %s756_s15, 2 }
   0xf   : > { %s645_s27 = scalar_lea.vmem %s127_s24, 640  ;;  %p653_p6 = scmp.lt.s32.totalorder %s127_s24, %s127_s24 }
  0x10   : > { %p836_p11 = pnand %p580_p10, %p953_p5  ;;  %p841_p13 = pnand %p593_p12, %p73_p4 }
  0x11   : > { %p646_p1 = scmp.ne.s32.totalorder %s127_s24, %s645_s27  ;;  %p654_p7 = scmp.lt.s32.totalorder %s645_s27, %s645_s27 }
  0x12   : > { %p636_p0 = pneg %p836_p11 }
  0x13   : > { %p655_p10 = por %p654_p7, %p653_p6 }
  0x14   : > { %p648_p2 = pnand %p646_p1, %p636_p0 }
  0x16   : > { %p649_p3 = pneg %p648_p2 }
  0x18   : > { %p656_p5 = pnand %p655_p10, %p649_p3 }
  0x1a   : > { %659 = shalt.err (!%p656_p5)
}
  0x1b   : > { %s759_s28 = smov 128   ;;  %s760_s29 = smov 8  }
  0x1c   : > { %583 = dma.hbm_to_vmem [thread:$0]  (!%p836_p11), %s949_s0, 640, %s127_s24, [#allocation3], %s759_s28, %s759_s28, %s760_s29  }
  0x1d   : > { %s761_s5 = smov [#allocation4]   ;;  %s153_s7 = sand.u32 1, %s756_s15  }
  0x1e   : > { %s139_s6 = sshll.u32 %s761_s5, 4  ;;  %s140_s6 = int_to_ptr.vmem [resolvable:$true] %s139_s6 }
  0x1f   : > { %s671_s8 = scalar_lea.vmem %s140_s6, 256  ;;  %p679_p1 = scmp.lt.s32.totalorder %s140_s6, %s140_s6 }
  0x20   : > { %p672_p4 = scmp.ne.s32.totalorder %s140_s6, %s671_s8  ;;  %p680_p2 = scmp.lt.s32.totalorder %s671_s8, %s671_s8 }
  0x22   : > { %p674_p5 = pnand %p672_p4, %p636_p0  ;;  %p681_p3 = por %p680_p2, %p679_p1 }
  0x24   : > { %p675_p12 = pneg %p674_p5 }
  0x26   : > { %p682_p6 = pnand %p681_p3, %p675_p12 }
  0x28   : > { %685 = shalt.err (!%p682_p6)
}
  0x29   : > { %586 = dma.hbm_to_vmem [thread:$0]  (!%p836_p11), %s950_s1, 256, %s140_s6, [#allocation5], %s759_s28, %s759_s28, %s760_s29  }
  0x2a   : > { %s155_s11 = sand.u32 1, %s752_s14   ;;  %s527_s12 = sshll.u32 %s756_s15, 8 }
  0x2b   : > { %s510_s18 = sshll.u32 %s155_s11, 4  ;;  %s875_s24 = scalar_lea.hbm %s951_s2, %s527_s12 }
  0x2c   : > { %s157_s25 = scalar_lea.vmem [#allocation6], %s510_s18  ;;  %s879_s30 = scalar_lea.sflag [#allocation3], %s153_s7 }
  0x2d   : > { %s164_s27 = sshll.u32 %s157_s25, 4  ;;  %s686_s4 = scalar_lea.hbm %s875_s24, 256  ;;  %s877_s27 = int_to_ptr.vmem [resolvable:$true] %s164_s27 }
  0x2e   : > { %p687_p0 = scmp.ne.s32.totalorder %s875_s24, %s686_s4  ;;  %p688_p11 = pneg %p841_p13 }
  0x2f   : > { %s691_s6 = scalar_lea.hbm %s951_s2, 512  ;;  %p692_p4 = scmp.lt.s32.totalorder %s875_s24, %s951_s2 }
  0x30   : > { %p689_p7 = pnand %p688_p11, %p687_p0  ;;  %p693_p5 = scmp.lt.s32.totalorder %s691_s6, %s686_s4 }
  0x32   : > { %p690_p10 = pneg %p689_p7  ;;  %p694_p12 = por %p693_p5, %p692_p4 }
  0x34   : > { %p695_p1 = pnand %p694_p12, %p690_p10 }
  0x36   : > { %698 = shalt.err (!%p695_p1)
}
  0x37   : > { %s699_s7 = scalar_lea.vmem %s877_s27, 256  ;;  %s762_s10 = smov [#allocation6]  }
  0x38   : > { %p700_p2 = scmp.ne.s32.totalorder %s877_s27, %s699_s7  ;;  %s704_s11 = sshll.u32 %s762_s10, 4  ;;  %s705_s11 = int_to_ptr.vmem [resolvable:$false] %s704_s11 }
  0x39   : > { %s706_s12 = scalar_lea.vmem %s705_s11, 512  ;;  %p707_p0 = scmp.lt.s32.totalorder %s877_s27, %s705_s11 }
  0x3a   : > { %p702_p3 = pnand %p700_p2, %p688_p11  ;;  %p708_p7 = scmp.lt.s32.totalorder %s706_s12, %s699_s7 }
  0x3c   : > { %p703_p6 = pneg %p702_p3  ;;  %p709_p8 = por %p708_p7, %p707_p0 }
  0x3e   : > { %p710_p9 = pnand %p709_p8, %p703_p6 }
  0x40   : > { %713 = shalt.err (!%p710_p9)
}
  0x41   : > { %590 = dma.hbm_to_vmem [thread:$0]  (!%p841_p13), %s875_s24, 256, %s877_s27, %s879_s30, %s759_s28, %s759_s28, %s760_s29  }
  0x42   : > { %p960_p11 = scmp.ne.s32.totalorder %s957_s22, 0 }
  0x43   : > { %p961_p10 = scmp.eq.s32.totalorder (!%p960_p11), %s804_s16, 0 }
  0x44   : > { %176 = sbr.rel (%p960_p11) target bundleno = 487 (0x1e7), region = 32 }
  0x49   : > { %731 = dma.done.wait (%p961_p10), [#allocation3], 640   ;;  %p962_p4 = pmov %p961_p10 }
  0x4b   : > { %733 = vsyncadd (%p962_p4), [#allocation3], 4294966656  ;;  %p963_p8 = pmov %p962_p4 }
  0x4c   : > { %p964_p9 = pmov %p962_p4 }
  0x4d   : > { %735 = dma.done.wait (%p963_p8), [#allocation5], 256  }
  0x4e   : > { %737 = vsyncadd (%p964_p9), [#allocation5], 4294967040  ;;  %s186_s26 = sand.u32 1, %s804_s16   ;;  %s188_s28 = sand.u32 1, %s748_s13  }
  0x4f   : > { %s516_s29 = sshll.u32 %s188_s28, 4  ;;  %s187_s22 = scalar_lea.sflag [#allocation3], %s186_s26 }
  0x50   : > { %s190_s18 = scalar_lea.vmem [#allocation6], %s516_s29  ;;  %p965_p13 = scmp.ne.s32.totalorder %s956_s21, 0 }
  0x52   : > { %739 = dma.done.wait (%p965_p13), %s187_s22, 256  }
  0x53   : > { %741 = vsyncadd (%p965_p13), %s187_s22, 4294967040  ;;  %vm227_vm0 = vcmask 130048   ;;  %v224_v0 = vld [vmem:[#allocation4 + $0x8] sm:$0xff]  ;;  %v223_v1 = vld [vmem:[#allocation4] sm:$0xff]  ;;  %v763_v4 = vmov 0.0   ;;  %vm764_vm1 = vmmov 0  }
  0x54   : > { %v225_v2 = vld [vmem:[%s190_s18] sm:$0xff]  ;;  %539 = vmatprep.subr.mxu0 %v224_v0  ;;  %v226_v3 = vld [vmem:[%s190_s18 + $0x8] sm:$0xff]  ;;  %565 = vmatprep.subr.mxu1 %v763_v4  ;;  %p213_p5 = scmp.lt.s32.totalorder %s804_s16, 1 }
  0x55   : > { %543 = vmatprep.mubr.msk.f32.mxu0 %vm227_vm0, %v225_v2  ;;  %540 = vmatpush3.msra.mxu0 %v224_v0  ;;  %v220_v6 = vld [vmem:[#allocation2 + $0x10] sm:$0xff]  ;;  %v218_v7 = vld [vmem:[#allocation2] sm:$0xff]  ;;  %v221_v9 = vld [vmem:[#allocation2 + $0x18] sm:$0xff] }
  0x56   : > { %541 = vmatprep.subr.mxu0 %v223_v1  ;;  %556 = vmatprep.mubr.msk.f32.mxu1 %vm764_vm1, %v763_v4  ;;  %v219_v10 = vld [vmem:[#allocation2 + $0x8] sm:$0xff]  ;;  %v222_v11 = vld [vmem:[#allocation2 + $0x20] sm:$0xff]  ;;  %s971_s16 = smov (!%p213_p5, %s804_s16), 1 }
  0x57   : > { %542 = vmatpush3.msra.mxu0 %v223_v1  ;;  %s569_s21 = smul.u32 40, %s971_s16 }
  0x58   : > { %544 = vmatmul.mubr.msk.f32.vlgmr.msra.gmra.mxu0 %vm227_vm0, %v226_v3  ;;  %546 = vmatprep.subr.mxu0 %v763_v4 }
  0x59   : > { %550 = vmatprep.mubr.msk.f32.mxu0 %vm764_vm1, %v763_v4  ;;  %s217_s24 = scalar_lea.vmem %s952_s3, %s569_s21 }
 0x118   : > { %v545_v5 = vpop.f32.mrf.mxu0 }
 0x119   : > { %547 = vmatpush3.msra.mxu0 %v545_v5  ;;  %567 = vmatpush3.msra.mxu1 %v545_v5 }
 0x11a   : > { %v300_v8 = vpop.f32.mrf.mxu0  ;;  %548 = vmatprep.subr.mxu0 %v763_v4  ;;  %566 = vmatprep.subr.mxu1 %v763_v4 }
 0x11b   : > { %549 = vmatpush3.msra.mxu0 %v300_v8  ;;  %568 = vmatpush3.msra.mxu1 %v300_v8 }
 0x11c   : > { %557 = vmatmul.mubr.msk.f32.vlgmr.msra.gmra.mxu1 %vm227_vm0, %v220_v6  ;;  %551 = vmatmul.mubr.msk.f32.vlgmr.msra.gmra.mxu0 %vm227_vm0, %v218_v7 }
 0x11d   : > { %559 = vmatprep.mubr.msk.f32.mxu1 %vm764_vm1, %v763_v4  ;;  %553 = vmatprep.mubr.msk.f32.mxu0 %vm764_vm1, %v763_v4 }
 0x120   : > { %560 = vmatmul.mubr.msk.f32.gmra.mxu1 %vm227_vm0, %v221_v9  ;;  %554 = vmatmul.mubr.msk.f32.gmra.mxu0 %vm227_vm0, %v219_v10 }
 0x121   : > { %562 = vmatprep.mubr.msk.f32.mxu1 %vm764_vm1, %v763_v4 }
 0x124   : > { %563 = vmatmul.mubr.msk.f32.gmra.mxu1 %vm227_vm0, %v222_v11 }
 0x1dc   : > { %v400_v12 = vpop.f32.mrf.mxu1  ;;  %v390_v13 = vpop.f32.mrf.mxu0 }
 0x1dd   : > { %416 = vst [vmem:[%s217_s24 + $0x10] sm:$0xff] %v400_v12  ;;  %414 = vst [vmem:[%s217_s24] sm:$0xff] %v390_v13 }
 0x1de   : > { %v558_v14 = vpop.f32.mrf.mxu1  ;;  %v552_v15 = vpop.f32.mrf.mxu0 }
 0x1e0   : > { %v405_v16 = vpop.f32.mrf.mxu1  ;;  %v395_v17 = vpop.f32.mrf.mxu0 }
 0x1e1   : > { %417 = vst [vmem:[%s217_s24 + $0x18] sm:$0xff] %v405_v16  ;;  %415 = vst [vmem:[%s217_s24 + $0x8] sm:$0xff] %v395_v17 }
 0x1e2   : > { %v561_v18 = vpop.f32.mrf.mxu1  ;;  %v555_v19 = vpop.f32.mrf.mxu0 }
 0x1e4   : > { %v410_v20 = vpop.f32.mrf.mxu1 }
 0x1e5   : > { %418 = vst [vmem:[%s217_s24 + $0x20] sm:$0xff] %v410_v20 }
 0x1e6   : > { %v564_v21 = vpop.f32.mrf.mxu1 }
 0x1e7 PF: > { %p12_p12 = scmp.ge.s32.totalorder %s807_s17, 4   ;;  %s966_s12 = smov %s748_s13 }
 0x1e8   : > { %s967_s13 = smov %s752_s14  ;;  %s968_s14 = smov %s817_s20 }
 0x1e9   : > { %s969_s15 = smov %s807_s17  ;;  %14 = sbr.rel (!%p12_p12) target bundleno = 3 (0x3), region = 79 }
 0x1ee   :  { %440 = vsyncpa [#allocation3], 1 }
 0x1ef   :  { %442 = vsyncpa [#allocation3 + $0x1], 1 }
 0x1f0   :  { %443 = vsyncpa [#allocation5], 1 }

</bundles_post_ra>
